<compile_context>
chip_gen: v7x
topology: tpu7x:2x2x1
jax: 0.10.0
libtpu: 0.0.40
codegen_flags: <defaults>
</compile_context>

<pallas_src>
import jax
import jax.numpy as jnp
from jax.experimental import pallas as pl
from jax.experimental.pallas import tpu as pltpu


def _cosine_embed_kernel(tau_ref, w_ref, b_ref, out_ref, cos_ref):
    # tau_ref : (tm, 1)      tau column for this M tile
    # w_ref   : (K, TE)      weight tile (transposed PyTorch layout)
    # b_ref   : (1, TE)      bias tile
    # out_ref : (tm, TE)
    # cos_ref : (tm, K)      VMEM scratch, persists across the E grid axis
    K = cos_ref.shape[1]

    # Compute cosines once per M tile (first E tile only), reuse afterwards.
    @pl.when(pl.program_id(1) == 0)
    def _():
        idx = jax.lax.broadcasted_iota(jnp.int32, (1, K), 1) + 1      # 1..K
        i_pi = jnp.float32(jnp.pi) * idx.astype(jnp.float32)          # (1, K)
        cos_ref[...] = jnp.cos(tau_ref[...] * i_pi)                   # (tm, K)

    acc = jnp.dot(cos_ref[...], w_ref[...],
                  preferred_element_type=jnp.float32)                 # MXU
    acc = acc + b_ref[...]
    out_ref[...] = jnp.maximum(acc, 0.0).astype(out_ref.dtype)


def _round_up(x, m):
    return ((x + m - 1) // m) * m


def cosine_embedding_forward(taus, weight, bias, *, num_cosines, embedding_dim,
                             tile_m=512, max_tile_e=1024):
    """taus: (B, N) f32; weight: (E, K) (PyTorch layout); bias: (E,) -> (B, N, E)."""
    B, N = taus.shape
    M = B * N
    K = num_cosines
    E = embedding_dim

    # ---- E padding / tile selection (lane-aligned, unmasked stores) ----
    E_pad = _round_up(E, 128)
    tile_e = 128
    for cand in range(max_tile_e, 127, -128):      # largest mult-of-128 divisor
        if E_pad % cand == 0:
            tile_e = cand
            break

    # ---- M padding / tile selection ----
    if M <= tile_m:
        tm = _round_up(M, 8)
        M_pad = tm
    else:
        tm = tile_m
        M_pad = _round_up(M, tm)

    # ---- pad operands (zero-padded rows/cols are sliced away afterwards) ----
    tau_col = jnp.zeros((M_pad, 1), jnp.float32)
    tau_col = tau_col.at[:M, 0].set(taus.reshape(M).astype(jnp.float32))
    w_t = jnp.zeros((K, E_pad), jnp.float32)
    w_t = w_t.at[:, :E].set(weight.T.astype(jnp.float32))
    b_row = jnp.zeros((1, E_pad), jnp.float32)
    b_row = b_row.at[0, :E].set(bias.astype(jnp.float32))

    grid = (M_pad // tm, E_pad // tile_e)

    out = pl.pallas_call(
        _cosine_embed_kernel,
        out_shape=jax.ShapeDtypeStruct((M_pad, E_pad), jnp.float32),
        grid_spec=pltpu.PrefetchScalarGridSpec(
            num_scalar_prefetch=0,
            grid=grid,
            in_specs=[
                pl.BlockSpec((tm, 1), lambda m, e: (m, 0)),         # tau column
                pl.BlockSpec((K, tile_e), lambda m, e: (0, e)),     # weight tile
                pl.BlockSpec((1, tile_e), lambda m, e: (0, e)),     # bias tile
            ],
            out_specs=pl.BlockSpec((tm, tile_e), lambda m, e: (m, e)),
            scratch_shapes=[pltpu.VMEM((tm, K), jnp.float32)],      # cosines
        ),
        compiler_params=pltpu.CompilerParams(
            # M tiles can be sharded across TensorCores (v7x); the E axis reuses
            # the cosine scratch sequentially, so it must stay "arbitrary".
            dimension_semantics=("parallel", "arbitrary"),
        ),
    )(tau_col, w_t, b_row)

    return out[:M, :E].reshape(B, N, E)


if __name__ == "__main__":
    # Small shapes consistent with the module's forward; embedding_dim is the
    # real 7*7*64 = 3136 to exercise the non-multiple-of-128 padding path.
    batch_size = 2
    N = 8                      # number of quantile fractions
    num_cosines = 64
    embedding_dim = 7 * 7 * 64  # 3136

    key = jax.random.PRNGKey(0)
    k_tau, k_w, k_b = jax.random.split(key, 3)

    # taus in [0, 1) like quantile fractions.
    taus = jax.random.uniform(k_tau, (batch_size, N), dtype=jnp.float32)

    # Deterministic nn.Linear-style init: U(-1/sqrt(K), 1/sqrt(K)).
    bound = 1.0 / jnp.sqrt(jnp.float32(num_cosines))
    weight = jax.random.uniform(k_w, (embedding_dim, num_cosines),
                                dtype=jnp.float32, minval=-bound, maxval=bound)
    bias = jax.random.uniform(k_b, (embedding_dim,),
                              dtype=jnp.float32, minval=-bound, maxval=bound)

    out = cosine_embedding_forward(
        taus, weight, bias,
        num_cosines=num_cosines, embedding_dim=embedding_dim)
    out = jax.block_until_ready(out)

    # Pure-JAX reference check (same semantics as the PyTorch forward).
    i_pi = jnp.pi * jnp.arange(1, num_cosines + 1, dtype=jnp.float32)
    cosines = jnp.cos(taus[:, :, None] * i_pi[None, None, :]).reshape(
        -1, num_cosines)
    ref = jnp.maximum(cosines @ weight.T + bias, 0.0).reshape(
        batch_size, N, embedding_dim)

    assert out.shape == (batch_size, N, embedding_dim)
    assert jnp.allclose(out, ref, atol=1e-4, rtol=1e-4)

    print("KERNEL_OK")
</pallas_src>

<mosaic_0001>
module attributes {stable_mosaic.version = 11 : i64} {
  func.func @_cosine_embed_kernel(%arg0: i32, %arg1: i32, %arg2: memref<16x1xf32, #tpu.memory_space<vmem>>, %arg3: memref<64x640xf32, #tpu.memory_space<vmem>>, %arg4: memref<1x640xf32, #tpu.memory_space<vmem>>, %arg5: memref<16x640xf32, #tpu.memory_space<vmem>>, %arg6: memref<16x64xf32, #tpu.memory_space<vmem>>) attributes {dimension_semantics = [#tpu.dimension_semantics<parallel>, #tpu.dimension_semantics<arbitrary>], iteration_bounds = array<i64: 1, 5>, scalar_prefetch = 0 : i64, scratch_operands = 1 : i64, tpu.core_type = #tpu.core_type<tc>, window_params = [{transform_indices = @transform_0, window_bounds = array<i64: 16, 1>}, {transform_indices = @transform_1, window_bounds = array<i64: 64, 640>}, {transform_indices = @transform_2, window_bounds = array<i64: 1, 640>}, {transform_indices = @transform_3, window_bounds = array<i64: 16, 640>}]} {
    %c0_i32 = arith.constant 0 : i32
    %0 = arith.cmpi eq, %arg1, %c0_i32 : i32
    %1 = arith.extui %0 : i1 to i32
    %c0_i32_0 = arith.constant 0 : i32
    %2 = arith.cmpi ne, %1, %c0_i32_0 : i32
    scf.if %2 {
      %12 = tpu.iota {dimensions = array<i32: 1>} : vector<1x64xi32>
      %c1_i32 = arith.constant 1 : i32
      %13 = vector.broadcast %c1_i32 : i32 to vector<1x64xi32>
      %14 = arith.addi %12, %13 : vector<1x64xi32>
      %15 = arith.sitofp %14 : vector<1x64xi32> to vector<1x64xf32>
      %cst_9 = arith.constant 3.14159274 : f32
      %16 = vector.broadcast %cst_9 : f32 to vector<1x64xf32>
      %17 = arith.mulf %16, %15 : vector<1x64xf32>
      %c0_10 = arith.constant 0 : index
      %c0_11 = arith.constant 0 : index
      %18 = vector.load %arg2[%c0_10, %c0_11] : memref<16x1xf32, #tpu.memory_space<vmem>>, vector<16x1xf32>
      %19 = vector.broadcast %18 : vector<16x1xf32> to vector<16x64xf32>
      %20 = vector.broadcast %17 : vector<1x64xf32> to vector<16x64xf32>
      %21 = arith.mulf %19, %20 : vector<16x64xf32>
      %22 = math.cos %21 : vector<16x64xf32>
      %c0_12 = arith.constant 0 : index
      %c0_13 = arith.constant 0 : index
      %23 = vector.load %arg6[%c0_12, %c0_13] : memref<16x64xf32, #tpu.memory_space<vmem>>, vector<16x64xf32>
      tpu.vector_store %arg6[%c0_12, %c0_13], %22 {strides = array<i32>} : memref<16x64xf32, #tpu.memory_space<vmem>>, vector<16x64xf32>,
    } else {
    }
    %c0 = arith.constant 0 : index
    %c0_1 = arith.constant 0 : index
    %3 = vector.load %arg6[%c0, %c0_1] : memref<16x64xf32, #tpu.memory_space<vmem>>, vector<16x64xf32>
    %c0_2 = arith.constant 0 : index
    %c0_3 = arith.constant 0 : index
    %4 = vector.load %arg3[%c0_2, %c0_3] : memref<64x640xf32, #tpu.memory_space<vmem>>, vector<64x640xf32>
    %cst = arith.constant dense<0.000000e+00> : vector<16x640xf32>
    %5 = tpu.matmul %3, %4, %cst {dimension_numbers = #tpu.dot_dimension_numbers<[1], [0], [0], [1], [0, 0, 1, 1], [], []>} : vector<16x64xf32>, vector<64x640xf32>, vector<16x640xf32> -> vector<16x640xf32>
    %c0_4 = arith.constant 0 : index
    %c0_5 = arith.constant 0 : index
    %6 = vector.load %arg4[%c0_4, %c0_5] : memref<1x640xf32, #tpu.memory_space<vmem>>, vector<1x640xf32>
    %7 = vector.broadcast %6 : vector<1x640xf32> to vector<16x640xf32>
    %8 = arith.addf %5, %7 : vector<16x640xf32>
    %cst_6 = arith.constant 0.000000e+00 : f32
    %9 = vector.broadcast %cst_6 : f32 to vector<16x640xf32>
    %10 = arith.maximumf %8, %9 : vector<16x640xf32>
    %c0_7 = arith.constant 0 : index
    %c0_8 = arith.constant 0 : index
    %11 = vector.load %arg5[%c0_7, %c0_8] : memref<16x640xf32, #tpu.memory_space<vmem>>, vector<16x640xf32>
    tpu.vector_store %arg5[%c0_7, %c0_8], %10 {strides = array<i32>} : memref<16x640xf32, #tpu.memory_space<vmem>>, vector<16x640xf32>,
    return
  }
  func.func @transform_0(%arg0: i32, %arg1: i32) -> (i32, i32) {
    %c0_i32 = arith.constant 0 : i32
    %c0_i32_0 = arith.constant 0 : i32
    return %arg0, %c0_i32 : i32, i32
  }
  func.func @transform_1(%arg0: i32, %arg1: i32) -> (i32, i32) {
    %c0_i32 = arith.constant 0 : i32
    %c0_i32_0 = arith.constant 0 : i32
    return %c0_i32, %arg1 : i32, i32
  }
  func.func @transform_2(%arg0: i32, %arg1: i32) -> (i32, i32) {
    %c0_i32 = arith.constant 0 : i32
    %c0_i32_0 = arith.constant 0 : i32
    return %c0_i32, %arg1 : i32, i32
  }
  func.func @transform_3(%arg0: i32, %arg1: i32) -> (i32, i32) {
    %c0_i32 = arith.constant 0 : i32
    return %arg0, %arg1 : i32, i32
  }
}

</mosaic_0001>

<bundles_post_ra>
// kernel: tpu_custom_call.1
= control target key start
LH: loop header
LB: loop body
LE: loop exit
PB: predicated region body
PF: predicated region fallthrough
CT: control target
= control target key end

     0   :  { %8 = vsyncpa [#allocation4], 0  ;;  %s1721_s0 = inlined_call_operand.vmem [shape: f32[16,1], index: 0, kind: input, shape index: {}]   ;;  %s1722_s1 = inlined_call_operand.hbm [shape: f32[64,3200], index: 1, kind: input, shape index: {}]   ;;  %s1723_s2 = inlined_call_operand.hbm [shape: f32[1,3200], index: 2, kind: input, shape index: {}]   ;;  %s1724_s3 = inlined_call_operand.hbm [shape: f32[16,3200], index: 3, kind: output, shape index: {}]  }
   0x1   :  { %10 = vsyncpa [#allocation4 + $0x1], 0 }
   0x2   :  { %11 = vsyncpa [#allocation7], 0 }
   0x3   :  { %13 = vsyncpa [#allocation7 + $0x1], 0 }
   0x4   :  { %14 = vsyncpa [#allocation5], 0 }
   0x5   :  { %16 = vsyncpa [#allocation5 + $0x1], 0  ;;  %s1357_s12 = smov 0   ;;  %s1359_s13 = smov 0  }
   0x6   :  { %s1361_s14 = smov 0   ;;  %s1363_s15 = smov 0  }
   0x7   :  { %s1365_s16 = smov 0   ;;  %s1367_s17 = smov 0  }
   0x8 LB: > { %s963_s18 = sadd.s32 4294967295, %s1318_s17   ;;  %s964_s19 = sadd.s32 4294967294, %s1318_s17   ;;  %s1318_s17 = sphi %s1367_s17, %s22_s17   ;;  %s1314_s16 = sphi %s1365_s16, %s1743_s16   ;;  %s1310_s15 = sphi %s1363_s15, %s1742_s15   ;;  %s1306_s14 = sphi %s1361_s14, %s1741_s14   ;;  %s1302_s13 = sphi %s1359_s13, %s1740_s13   ;;  %s1298_s12 = sphi %s1357_s12, %s1739_s12  }
   0x9   : > { %s31_s20 = sadd.s32 1, %s1314_s16  ;;  %s67_s21 = sadd.s32 1, %s1306_s14 }
   0xa   : > { %p32_p0 = scmp.ge.s32.totalorder %s31_s20, 5  ;;  %p74_p1 = scmp.ne.s32.totalorder %s1306_s14, %s1302_s13 }
   0xb   : > { %p75_p2 = scmp.eq.s32.totalorder %s1318_s17, 0  ;;  %p80_p3 = scmp.ne.s32.totalorder %s1302_s13, %s1298_s12 }
   0xc   : > { %s1745_s20 = smov (%p32_p0, %s31_s20), 0  ;;  %p81_p5 = scmp.eq.s32.totalorder %s963_s18, 0 }
   0xd   : > { %p1398_p4 = por %p75_p2, %p74_p1  ;;  %s64_s23 = ssub.s32 %s1314_s16, %s1745_s20 }
   0xe   : > { %p132_p6 = scmp.eq.s32.totalorder %s963_s18, 4  ;;  %p65_p7 = scmp.eq.s32.totalorder %s64_s23, 0 }
   0xf   : > { %p1404_p8 = por %p81_p5, %p80_p3  ;;  %p138_p10 = scmp.eq.s32.totalorder %s964_s19, 4 }
  0x10   : > { %p1408_p9 = por %p132_p6, %p74_p1  ;;  %p1099_p12 = scmp.lt.s32.totalorder %s1318_s17, 5 }
  0x11   : > { %s1728_s24 = scalar_select %p1404_p8, 1, 0 }
  0x12   : > { %s1729_s25 = scalar_select %p1408_p9, 1, 0 }
  0x13   : > { %s1413_s26 = scalar_select %p65_p7, %s1306_s14, %s67_s21  }
  0x14   : > { %p1415_p11 = por %p138_p10, %p80_p3  ;;  %s1421_s28 = sand.u32 1, %s1306_s14  }
  0x15   : > { %s1069_s29 = smul.u32 320, %s1421_s28  ;;  %p1427_p13 = pnand %p1099_p12, %p1398_p4 }
  0x16   : > { %s1730_s27 = scalar_select %p1415_p11, 1, 0 }
  0x17   : > { %s989_s30 = smul.u32 640, %s1314_s16  ;;  %s171_s8 = scalar_lea.vmem [#allocation3], %s1069_s29 }
  0x18   : > { %s178_s9 = sshll.u32 %s171_s8, 4  ;;  %s168_s10 = scalar_lea.sflag [#allocation4], %s1421_s28  ;;  %s1436_s9 = int_to_ptr.vmem [resolvable:$true] %s178_s9 }
  0x19   : > { %s1434_s7 = scalar_lea.hbm %s1722_s1, %s989_s30  ;;  %p1174_p1 = pneg %p1427_p13 }
  0x1a   : > { %s1172_s11 = scalar_lea.hbm %s1434_s7, 5120  ;;  %s1177_s21 = scalar_lea.hbm %s1722_s1, 25600 }
  0x1b   : > { %p1173_p0 = scmp.ne.s32.totalorder %s1434_s7, %s1172_s11  ;;  %p1178_p4 = scmp.lt.u32.totalorder %s1434_s7, %s1722_s1 }
  0x1c   : > { %p1179_p5 = scmp.lt.u32.totalorder %s1177_s21, %s1172_s11  ;;  %p1181_p7 = scmp.lt.u32.totalorder %s1172_s11, %s1434_s7 }
  0x1d   : > { %p1175_p2 = pnand %p1174_p1, %p1173_p0 }
  0x1e   : > { %p1180_p6 = por %p1179_p5, %p1178_p4 }
  0x1f   : > { %p1176_p3 = pneg %p1175_p2 }
  0x20   : > { %p1182_p10 = por %p1181_p7, %p1180_p6 }
  0x22   : > { %p1183_p12 = pnand %p1182_p10, %p1176_p3 }
  0x24   : > { %1186 = shalt.err (!%p1183_p12)
}
  0x25   : > { %s1187_s29 = scalar_lea.vmem %s1436_s9, 5120  ;;  %s1320_s30 = smov [#allocation3]  }
  0x26   : > { %p1188_p0 = scmp.ne.s32.totalorder %s1436_s9, %s1187_s29  ;;  %s1192_s5 = sshll.u32 %s1320_s30, 4  ;;  %s1193_s5 = int_to_ptr.vmem [resolvable:$false] %s1192_s5 }
  0x27   : > { %s1194_s6 = scalar_lea.vmem %s1193_s5, 10240  ;;  %p1195_p9 = scmp.lt.s32.totalorder %s1436_s9, %s1193_s5 }
  0x28   : > { %p1190_p2 = pnand %p1188_p0, %p1174_p1  ;;  %p1196_p4 = scmp.lt.s32.totalorder %s1194_s6, %s1187_s29 }
  0x2a   : > { %p1191_p11 = pneg %p1190_p2  ;;  %p1197_p5 = por %p1196_p4, %p1195_p9 }
  0x2c   : > { %p1198_p6 = pnand %p1197_p5, %p1191_p11 }
  0x2e   : > { %1201 = shalt.err (!%p1198_p6)
}
  0x2f   : > { %s1321_s8 = smov 3200   ;;  %s1322_s11 = smov 640  }
  0x30   : > { %s1323_s18 = smov 40   ;;  %p970_p3 = scmp.ge.s32.totalorder %s1318_s17, 1 }
  0x31   : > { %1091 = dma.hbm_to_vmem [thread:$0]  (!%p1427_p13), %s1434_s7, 5120, %s1436_s9, %s168_s10, %s1321_s8, %s1322_s11, %s1323_s18  }
  0x32   : > { %p205_p9 = scmp.lt.s32.totalorder %s1318_s17, 6  ;;  %s1070_s19 = smul.u32 5, %s1421_s28 }
  0x33   : > { %s990_s22 = smul.u32 80, %s1314_s16  ;;  %s189_s7 = scalar_lea.sflag [#allocation7], %s1421_s28 }
  0x34   : > { %p1469_p11 = pnand %p970_p3, %p205_p9  ;;  %s192_s5 = scalar_lea.vmem [#allocation6], %s1070_s19 }
  0x35   : > { %s1477_s30 = scalar_lea.hbm %s1723_s2, %s990_s22  ;;  %s200_s6 = sshll.u32 %s192_s5, 4  ;;  %s201_s6 = int_to_ptr.vmem [resolvable:$true] %s200_s6 }
  0x36   : > { %s1732_s21 = scalar_select %p1469_p11, 1, 0 }
  0x37   : > { %s1202_s9 = scalar_lea.hbm %s1477_s30, 80  ;;  %s1207_s11 = scalar_lea.hbm %s1723_s2, 400 }
  0x38   : > { %p1203_p7 = scmp.ne.s32.totalorder %s1477_s30, %s1202_s9  ;;  %p1208_p0 = scmp.lt.u32.totalorder %s1477_s30, %s1723_s2 }
  0x39   : > { %p1209_p2 = scmp.lt.u32.totalorder %s1207_s11, %s1202_s9  ;;  %p1211_p5 = scmp.lt.u32.totalorder %s1202_s9, %s1477_s30 }
  0x3a   : > { %p1205_p10 = pnand %p1203_p7, %p1174_p1 }
  0x3b   : > { %p1210_p4 = por %p1209_p2, %p1208_p0 }
  0x3c   : > { %p1206_p12 = pneg %p1205_p10 }
  0x3d   : > { %p1212_p6 = por %p1211_p5, %p1210_p4 }
  0x3f   : > { %p1213_p3 = pnand %p1212_p6, %p1206_p12 }
  0x41   : > { %1216 = shalt.err (!%p1213_p3)
}
  0x42   : > { %s1217_s28 = scalar_lea.vmem %s201_s6, 80  ;;  %s1324_s19 = smov [#allocation6]  }
  0x43   : > { %p1218_p9 = scmp.ne.s32.totalorder %s201_s6, %s1217_s28  ;;  %s1222_s23 = sshll.u32 %s1324_s19, 4  ;;  %s1223_s23 = int_to_ptr.vmem [resolvable:$false] %s1222_s23 }
  0x44   : > { %s1224_s29 = scalar_lea.vmem %s1223_s23, 160  ;;  %p1225_p8 = scmp.lt.s32.totalorder %s201_s6, %s1223_s23 }
  0x45   : > { %p1220_p7 = pnand %p1218_p9, %p1174_p1  ;;  %p1226_p11 = scmp.lt.s32.totalorder %s1224_s29, %s1217_s28 }
  0x47   : > { %p1221_p10 = pneg %p1220_p7  ;;  %p1227_p0 = por %p1226_p11, %p1225_p8 }
  0x49   : > { %p1228_p2 = pnand %p1227_p0, %p1221_p10 }
  0x4b   : > { %1231 = shalt.err (!%p1228_p2)
}
  0x4c   : > { %1094 = dma.hbm_to_vmem [thread:$0]  (!%p1427_p13), %s1477_s30, 80, %s201_s6, %s189_s7  }
  0x4d   : > { %p1733_p12 = scmp.ne.s32.totalorder %s1732_s21, 0 }
  0x4e   : > { %s1502_s5 = sand.u32 (!%p1733_p12), 1, %s1302_s13   ;;  %p1734_p8 = scmp.ne.s32.totalorder (!%p1733_p12), %s1728_s24, 0 }
  0x4f   : > { %209 = sbr.rel (%p1733_p12) target bundleno = 583 (0x247), region = 32  ;;  %s212_s10 = scalar_lea.sflag (!%p1733_p12), [#allocation4], %s1502_s5 }
  0x50   : > { %s1071_s9 = smul.u32 (!%p1733_p12), 320, %s1502_s5 }
  0x52   : > { %s1506_s8 = scalar_lea.vmem (!%p1733_p12), [#allocation3], %s1071_s9 }
  0x56   : > { %1285 = dma.done.wait (%p1734_p8), %s212_s10, 5120  }
  0x57   : > { %1287 = vsyncadd (%p1734_p8), %s212_s10, 4294962176  ;;  %s1072_s4 = smul.u32 5, %s1502_s5  ;;  %s221_s21 = scalar_lea.sflag [#allocation7], %s1502_s5 }
  0x59   : > { %s1514_s30 = scalar_lea.vmem [#allocation6], %s1072_s4 }
  0x5a   : > { %1289 = dma.done.wait (%p1734_p8), %s221_s21, 80  }
  0x5b   : > { %1291 = vsyncadd (%p1734_p8), %s221_s21, 4294967216  ;;  %s1073_s6 = smul.u32 80, %s1502_s5  ;;  %p971_p13 = scmp.ne.s32.totalorder %s1310_s15, 0 }
  0x5c   : > { %v276_v0 = vld [vmem:[%s1721_s0] sm:$0xff] (!%p971_p13)  ;;  %v1325_v1 = vmov (!%p971_p13), 0   ;;  %v277_v2 = vld [vmem:[%s1721_s0 + $0x8] sm:$0xff] (!%p971_p13)  ;;  %v271_v3 = vlaneseq (!%p971_p13)  ;;  %v1326_v28 = vmov (!%p971_p13), 683565275  }
  0x5d   : > { %s1521_s7 = scalar_lea.vmem [#allocation8], %s1073_s6  ;;  %270 = sbr.rel (%p971_p13) target bundleno = 315 (0x13b), region = 44  ;;  %1163 = vset.pattern.permute.xlu0 (!%p971_p13), %v1325_v1  ;;  %v1327_v32 = vmov (!%p971_p13), 2475754826   ;;  %v1328_v34 = vmov (!%p971_p13), 2131351028  }
  0x5e   : > { %280 = vperm.xlu0 (!%p971_p13), %1163, %v276_v0   ;;  %v272_v4 = vand.u32 (!%p971_p13), 127, %v271_v3  ;;  %v1329_v36 = vmov (!%p971_p13), 2102212464   ;;  %v1330_v38 = vmov (!%p971_p13), 920167782  }
  0x5f   : > { %v1331_v45 = vmov (!%p971_p13), 1326507024  }
  0x60   : > { %v273_v5 = vadd.s32 (!%p971_p13), 1, %v272_v4 }
  0x62   : > { %285 = vperm.xlu0 (!%p971_p13), %1163, %v277_v2   ;;  %v274_v6 = vcvt.s32.f32 (!%p971_p13), %v273_v5 }
  0x64   : > { %v275_v7 = vmul.f32 3.1415927, %v274_v6 }
  0xdd   : > { %v281_v8 = vpop.permute.xlu0 %280 }
  0xde   : > { %v1530_v9 = vmul.f32 %v281_v8, %v275_v7 }
  0xe0   : > { %v290_v10 = vand.u32 2147483647, %v1530_v9  ;;  %v293_v11 = vand.u32 2139095040, %v1530_v9  ;;  %vm292_vm14 = vcmp.lt.s32.totalorder %v1530_v9, 0 }
  0xe1   : > { %v286_v12 = vpop.permute.xlu0 %285 }
  0xe2   : > { %v294_v13 = vshrl.u32 %v293_v11, 23  ;;  %v1534_v14 = vmul.f32 %v286_v12, %v275_v7  ;;  %v297_v15 = vand.u32 8388607, %v290_v10  ;;  %vm291_vm15 = vcmp.le.f32.partialorder %v290_v10, 0.7853982 }
  0xe4   : > { %v972_v16 = vadd.s32 4294967169, %v294_v13  ;;  %v396_v17 = vand.u32 2139095040, %v1534_v14  ;;  %v298_v19 = vor.u32 8388608, %v297_v15  ;;  %v393_v21 = vand.u32 2147483647, %v1534_v14 }
  0xe6   : > { %v300_v18 = vadd.s32 1, %v972_v16  ;;  %v397_v20 = vshrl.u32 %v396_v17, 23  ;;  %v1540_v26 = vshll.u32 %v298_v19, 8  ;;  %v400_v30 = vand.u32 8388607, %v393_v21 }
  0xe8   : > { %vm301_vm0 = vcmp.gt.s32.totalorder %v300_v18, 0  ;;  %v976_v23 = vadd.s32 4294967169, %v397_v20  ;;  %v401_v60 = vor.u32 8388608, %v400_v30 }
  0xe9   : > { %v302_v22 = vsel %vm301_vm0, %v300_v18, 0  ;;  %vm395_vm0 = vcmp.lt.s32.totalorder %v1534_v14, 0 }
  0xea   : > { %v303_v24 = vshrl.u32 %v302_v22, 5  ;;  %v304_v25 = vand.u32 31, %v302_v22  ;;  %v403_v31 = vadd.s32 1, %v976_v23  ;;  %v441_v11 = vshll.u32 %v401_v60, 8 }
  0xec   : > { %v305_v27 = vsub.s32 32, %v304_v25  ;;  %v307_v29 = vshll.u32 %v1326_v28, %v304_v25  ;;  %v310_v33 = vshll.u32 %v1327_v32, %v304_v25  ;;  %v313_v35 = vshll.u32 %v1328_v34, %v304_v25 }
  0xed   : > { %v316_v37 = vshll.u32 %v1329_v36, %v304_v25  ;;  %v319_v39 = vshll.u32 %v1330_v38, %v304_v25  ;;  %vm322_vm1 = vcmp.lt.s32.totalorder %v303_v24, 1  ;;  %vm324_vm2 = vcmp.lt.s32.totalorder %v303_v24, 3 }
  0xee   : > { %v308_v40 = vshrl.u32 %v1327_v32, %v305_v27  ;;  %v311_v41 = vshrl.u32 %v1328_v34, %v305_v27  ;;  %v314_v42 = vshrl.u32 %v1329_v36, %v305_v27  ;;  %v306_v43 = vshrl.u32 %v1326_v28, %v305_v27 }
  0xef   : > { %v317_v44 = vshrl.u32 %v1330_v38, %v305_v27  ;;  %v320_v46 = vshrl.u32 %v1331_v45, %v305_v27  ;;  %vm404_vm3 = vcmp.gt.s32.totalorder %v403_v31, 0  ;;  %vm325_vm4 = vcmp.lt.s32.totalorder %v303_v24, 4 }
  0xf0   : > { %v309_v47 = vor.u32 %v308_v40, %v307_v29  ;;  %v312_v48 = vor.u32 %v311_v41, %v310_v33  ;;  %v315_v49 = vor.u32 %v314_v42, %v313_v35  ;;  %v405_v52 = vsel %vm404_vm3, %v403_v31, 0 }
  0xf1   : > { %v318_v50 = vor.u32 %v317_v44, %v316_v37  ;;  %v321_v51 = vor.u32 %v320_v46, %v319_v39  ;;  %vm323_vm5 = vcmp.lt.s32.totalorder %v303_v24, 2  ;;  %v407_v63 = vand.u32 31, %v405_v52 }
  0xf2   : > { %v326_v53 = vsel %vm322_vm1, %v306_v43, %v309_v47  ;;  %v327_v54 = vsel %vm325_vm4, %v315_v49, 2102212464  ;;  %v330_v55 = vsel %vm322_vm1, %v309_v47, %v312_v48  ;;  %v334_v56 = vsel %vm322_vm1, %v312_v48, %v315_v49 }
  0xf3   : > { %v328_v57 = vsel %vm324_vm2, %v312_v48, %v327_v54  ;;  %v331_v58 = vsel %vm325_vm4, %v318_v50, 920167782  ;;  %v335_v59 = vsel %vm325_vm4, %v321_v51, 1326507024  ;;  %v406_v7 = vshrl.u32 %v405_v52, 5 }
  0xf4   : > { %v332_v61 = vsel %vm324_vm2, %v315_v49, %v331_v58  ;;  %v336_v62 = vsel %vm324_vm2, %v318_v50, %v335_v59  ;;  %v329_v0 = vsel %vm323_vm5, %v326_v53, %v328_v57  ;;  %v408_v8 = vsub.s32 32, %v407_v63 }
  0xf5   : > { %v333_v1 = vsel %vm323_vm5, %v330_v55, %v332_v61  ;;  %v337_v2 = vsel %vm323_vm5, %v334_v56, %v336_v62  ;;  %v345_v12 = vmul.u32 %v1540_v26, %v329_v0  ;;  %v410_v13 = vshll.u32 %v1326_v28, %v407_v63 }
  0xf6   : > { %v1553_v3 = vmul.u32.u64.low %v1540_v26, %v337_v2  ;;  %v1554_v4 = vmul.u32.u64.high %v1540_v26, %v337_v2, %v1553_v3  ;;  %v1557_v5 = vmul.u32.u64.low %v1540_v26, %v333_v1  ;;  %v1558_v6 = vmul.u32.u64.high %v1540_v26, %v333_v1, %v1557_v5 }
  0xf7   : > { %v413_v15 = vshll.u32 %v1327_v32, %v407_v63  ;;  %v416_v16 = vshll.u32 %v1328_v34, %v407_v63  ;;  %v411_v17 = vshrl.u32 %v1327_v32, %v408_v8  ;;  %v414_v18 = vshrl.u32 %v1328_v34, %v408_v8 }
  0xf8   : > { %v417_v19 = vshrl.u32 %v1329_v36, %v408_v8  ;;  %v419_v20 = vshll.u32 %v1329_v36, %v407_v63  ;;  %vm347_vm6 = vc.u32 %v1554_v4, %v1557_v5  ;;  %v348_v22 = vadd.s32 1, %v1558_v6 }
  0xf9   : > { %v420_v23 = vshrl.u32 %v1330_v38, %v408_v8  ;;  %v422_v24 = vshll.u32 %v1330_v38, %v407_v63  ;;  %v412_v25 = vor.u32 %v411_v17, %v410_v13  ;;  %v415_v27 = vor.u32 %v414_v18, %v413_v15 }
  0xfa   : > { %v418_v29 = vor.u32 %v417_v19, %v416_v16  ;;  %v423_v30 = vshrl.u32 %v1331_v45, %v408_v8  ;;  %v349_v26 = vsel %vm347_vm6, %v348_v22, %v1558_v6  ;;  %vm425_vm7 = vcmp.lt.s32.totalorder %v406_v7, 1 }
  0xfb   : > { %v421_v31 = vor.u32 %v420_v23, %v419_v20  ;;  %vm428_vm8 = vcmp.lt.s32.totalorder %v406_v7, 4  ;;  %v350_v32 = vadd.s32 %v349_v26, %v345_v12  ;;  %vm427_vm9 = vcmp.lt.s32.totalorder %v406_v7, 3 }
  0xfc   : > { %v424_v33 = vor.u32 %v423_v30, %v422_v24  ;;  %v430_v34 = vsel %vm428_vm8, %v418_v29, 2102212464  ;;  %v409_v35 = vshrl.u32 %v1326_v28, %v408_v8  ;;  %v433_v36 = vsel %vm425_vm7, %v412_v25, %v415_v27 }
  0xfd   : > { %v434_v37 = vsel %vm428_vm8, %v421_v31, 920167782  ;;  %v437_v39 = vsel %vm425_vm7, %v415_v27, %v418_v29  ;;  %v351_v40 = vadd.s32 536870912, %v350_v32  ;;  %vm426_vm10 = vcmp.lt.s32.totalorder %v406_v7, 2 }
  0xfe   : > { %v435_v38 = vsel %vm427_vm9, %v418_v29, %v434_v37  ;;  %v438_v41 = vsel %vm428_vm8, %v424_v33, 1326507024  ;;  %v429_v42 = vsel %vm425_vm7, %v409_v35, %v412_v25  ;;  %v431_v43 = vsel %vm427_vm9, %v415_v27, %v430_v34 }
  0xff   : > { %v436_v44 = vsel %vm426_vm10, %v433_v36, %v435_v38  ;;  %v439_v45 = vsel %vm427_vm9, %v421_v31, %v438_v41  ;;  %v352_v46 = vshrl.u32 %v351_v40, 30  ;;  %v432_v52 = vsel %vm426_vm10, %v429_v42, %v431_v43 }
 0x100   : > { %v440_v47 = vsel %vm426_vm10, %v437_v39, %v439_v45  ;;  %v1568_v48 = vmul.u32.u64.low %v441_v11, %v436_v44  ;;  %v1569_v49 = vmul.u32.u64.high %v441_v11, %v436_v44, %v1568_v48  ;;  %v448_v55 = vmul.u32 %v441_v11, %v432_v52 }
 0x101   : > { %v1571_v50 = vmul.u32.u64.low %v441_v11, %v440_v47  ;;  %v1572_v51 = vmul.u32.u64.high %v441_v11, %v440_v47, %v1571_v50  ;;  %v353_v28 = vshll.u32 %v352_v46, 30  ;;  %v346_v3 = vadd.s32 %v1557_v5, %v1554_v4 }
 0x102   : > { %v451_v54 = vadd.s32 1, %v1569_v49  ;;  %v376_v33 = vsub.s32 4, %v352_v46  ;;  %vm1590_vm1 = vcmp.le.f32.partialorder %v393_v21, 0.7853982  ;;  %vm496_vm4 = vcmask 523264  }
 0x103   : > { %v354_v53 = vsub.s32 %v350_v32, %v353_v28  ;;  %vm450_vm11 = vc.u32 %v1572_v51, %v1568_v48  ;;  %v449_v27 = vadd.s32 %v1568_v48, %v1572_v51  ;;  %vm382_vm6 = vweird.f32 %v1530_v9 }
 0x104   : > { %v452_v57 = vsel %vm450_vm11, %v451_v54, %v1569_v49  ;;  %v377_v39 = vsel %vm292_vm14, %v376_v33, %v352_v46  ;;  %vm485_vm10 = vweird.f32 %v1534_v14 }
 0x105   : > { %v356_v56 = vsub.s32 0, %v354_v53  ;;  %v453_v58 = vadd.s32 %v452_v57, %v448_v55  ;;  %v379_v41 = vsel %vm291_vm15, 0, %v377_v39 }
 0x106   : > { %v383_v44 = vand.u32 3, %v379_v41 }
 0x107   : > { %v973_v59 = vmin.u32 %v356_v56, %v354_v53  ;;  %v454_v60 = vadd.s32 536870912, %v453_v58 }
 0x108   : > { %vm388_vm2 = vcmp.eq.s32.totalorder %v383_v44, 2  ;;  %vm385_vm3 = vcmp.eq.s32.totalorder %v383_v44, 0  ;;  %vm384_vm5 = vcmp.lt.s32.totalorder %v383_v44, 2 }
 0x109   : > { %v358_v61 = vclz %v973_v59  ;;  %v1577_v62 = vshrl.u32 %v454_v60, 30 }
 0x10b   : > { %v974_v63 = vadd.s32 4294967294, %v358_v61  ;;  %v456_v0 = vshll.u32 %v1577_v62, 30  ;;  %v479_v47 = vsub.s32 4, %v1577_v62 }
 0x10d   : > { %vm975_vm12 = vcmp.lt.s32.totalorder %v974_v63, 0  ;;  %v457_v2 = vsub.s32 %v453_v58, %v456_v0  ;;  %v480_v21 = vsel %vm395_vm0, %v479_v47, %v1577_v62 }
 0x10e   : > { %v361_v1 = vsel %vm975_vm12, 0, %v974_v63  ;;  %v482_v55 = vsel %vm1590_vm1, 0, %v480_v21 }
 0x10f   : > { %v362_v6 = vsub.s32 32, %v361_v1  ;;  %v366_v7 = vsub.s32 4294967266, %v361_v1  ;;  %v459_v8 = vsub.s32 0, %v457_v2  ;;  %v363_v11 = vshll.u32 %v354_v53, %v361_v1 }
 0x110   : > { %v486_v56 = vand.u32 3, %v482_v55 }
 0x111   : > { %v364_v12 = vshrl.u32 %v346_v3, %v362_v6  ;;  %v367_v13 = vadd.s32 127, %v366_v7  ;;  %v977_v15 = vmin.u32 %v459_v8, %v457_v2 }
 0x112   : > { %vm491_vm7 = vcmp.eq.s32.totalorder %v486_v56, 2  ;;  %vm488_vm8 = vcmp.eq.s32.totalorder %v486_v56, 0  ;;  %vm487_vm9 = vcmp.lt.s32.totalorder %v486_v56, 2 }
 0x113   : > { %v365_v16 = vor.u32 %v364_v12, %v363_v11  ;;  %v368_v17 = vshll.u32 %v367_v13, 23  ;;  %v461_v18 = vclz %v977_v15 }
 0x115   : > { %v369_v19 = vor.u32 4788187, %v368_v17  ;;  %v978_v20 = vadd.s32 4294967294, %v461_v18  ;;  %v372_v23 = vcvt.s32.f32 %v365_v16 }
 0x117   : > { %v370_v22 = vand.u32 2147483647, %v369_v19  ;;  %vm979_vm13 = vcmp.lt.s32.totalorder %v978_v20, 0 }
 0x118   : > { %v464_v25 = vsel %vm979_vm13, 0, %v978_v20 }
 0x119   : > { %v373_v24 = vmul.f32 %v372_v23, %v370_v22  ;;  %v465_v4 = vsub.s32 32, %v464_v25  ;;  %v469_v5 = vsub.s32 4294967266, %v464_v25  ;;  %v466_v30 = vshll.u32 %v457_v2, %v464_v25 }
 0x11b   : > { %v374_v29 = vxor.u32 2147483648, %v373_v24  ;;  %v467_v26 = vshrl.u32 %v449_v27, %v465_v4  ;;  %v470_v31 = vadd.s32 127, %v469_v5 }
 0x11d   : > { %v375_v32 = vsel %vm292_vm14, %v374_v29, %v373_v24  ;;  %v468_v35 = vor.u32 %v467_v26, %v466_v30  ;;  %v471_v36 = vshll.u32 %v470_v31, 23 }
 0x11e   : > { %v378_v34 = vsel %vm291_vm15, %v1530_v9, %v375_v32 }
 0x11f   : > { %1164 = vcosq.f32 %v378_v34  ;;  %v472_v37 = vor.u32 4788187, %v471_v36  ;;  %v475_v38 = vcvt.s32.f32 %v468_v35 }
 0x120   : > { %1166 = vsinq.f32 %v378_v34 }
 0x121   : > { %v473_v40 = vand.u32 2147483647, %v472_v37 }
 0x123   : > { %v476_v42 = vmul.f32 %v475_v38, %v473_v40 }
 0x125   : > { %v477_v43 = vxor.u32 2147483648, %v476_v42 }
 0x127   : > { %v478_v45 = vsel %vm395_vm0, %v477_v43, %v476_v42 }
 0x128   : > { %v481_v46 = vsel %vm1590_vm1, %v1534_v14, %v478_v45 }
 0x129   : > { %v1165_v48 = vpop.eup %1164  ;;  %1168 = vcosq.f32 %v481_v46 }
 0x12a   : > { %v1167_v49 = vpop.eup %1166  ;;  %v389_v50 = vxor.u32 2147483648, %v1165_v48  ;;  %1170 = vsinq.f32 %v481_v46 }
 0x12b   : > { %v386_v51 = vxor.u32 2147483648, %v1167_v49 }
 0x12c   : > { %v390_v28 = vsel %vm388_vm2, %v389_v50, %v1167_v49 }
 0x12d   : > { %v387_v52 = vsel %vm385_vm3, %v1165_v48, %v386_v51 }
 0x12e   : > { %v391_v53 = vsel %vm384_vm5, %v387_v52, %v390_v28 }
 0x12f   : > { %v392_v54 = vsel %vm382_vm6, nan, %v391_v53 }
 0x130   : > { %497 = vst.msk [vmem:[#allocation2] sm:$0xff] %vm496_vm4, %v392_v54 }
 0x133   : > { %v1169_v57 = vpop.eup %1168 }
 0x134   : > { %v1171_v58 = vpop.eup %1170  ;;  %v492_v59 = vxor.u32 2147483648, %v1169_v57 }
 0x135   : > { %v489_v60 = vxor.u32 2147483648, %v1171_v58 }
 0x136   : > { %v493_v61 = vsel %vm491_vm7, %v492_v59, %v1171_v58 }
 0x137   : > { %v490_v62 = vsel %vm488_vm8, %v1169_v57, %v489_v60 }
 0x138   : > { %v494_v9 = vsel %vm487_vm9, %v490_v62, %v493_v61 }
 0x139   : > { %v495_v63 = vsel %vm485_vm10, nan, %v494_v9 }
 0x13a   : > { %498 = vst.msk [vmem:[#allocation2 + $0x8] sm:$0xff] %vm496_vm4, %v495_v63 }
 0x13b PF: > { %v502_v0 = vld [vmem:[%s1506_s8 + $0x8] sm:$0xff]  ;;  %v507_v1 = vld [vmem:[%s1506_s8 + $0x30] sm:$0xff]  ;;  %v501_v2 = vld [vmem:[%s1506_s8] sm:$0xff]  ;;  %v1332_v8 = vmov 0.0   ;;  %vm568_vm11 = vcmask 523264   ;;  %v543_v63 = vlaneseq  ;;  %s991_s24 = smul.u32 640, %s1310_s15 }
 0x13c   : > { %v1021_v3 = vpack.c.bf16 %v507_v1, %v502_v0  ;;  %v506_v14 = vld [vmem:[%s1506_s8 + $0x28] sm:$0xff]  ;;  %v512_v6 = vld [vmem:[%s1506_s8 + $0x58] sm:$0xff]  ;;  %v517_v7 = vld [vmem:[%s1506_s8 + $0x80] sm:$0xff]  ;;  %639 = vmatprep.mubr.f32.mxu0 %v1332_v8  ;;  %716 = vmatprep.mubr.f32.mxu1 %v1332_v8  ;;  %s841_s19 = sshll.u32 %s1521_s7, 4  ;;  %s825_s15 = scalar_lea.sflag [#allocation5], %s1502_s5  ;;  %s1671_s19 = int_to_ptr.vmem [resolvable:$true] %s841_s19 }
 0x13d   : > { %v1023_v11 = vpack.c.bf16 %v506_v14, %v501_v2  ;;  %v1025_v12 = vpack.c.bf16 %v517_v7, %v512_v6  ;;  %v511_v13 = vld [vmem:[%s1506_s8 + $0x50] sm:$0xff]  ;;  %v516_v15 = vld [vmem:[%s1506_s8 + $0x78] sm:$0xff]  ;;  %v522_v16 = vld [vmem:[%s1506_s8 + $0xa8] sm:$0xff]  ;;  %v544_v0 = vshrl.u32 %v543_v63, 7  ;;  %s1669_s9 = scalar_lea.hbm %s1724_s3, %s991_s24  ;;  %s1232_s10 = scalar_lea.vmem %s1671_s19, 1280 }
 0x13e   : > { %1022 = vmatprep.subr.bf16.mxu0 %v1021_v3  ;;  %v527_v17 = vld [vmem:[%s1506_s8 + $0xd0] sm:$0xff]  ;;  %v1027_v18 = vpack.c.bf16 %v516_v15, %v511_v13  ;;  %v521_v19 = vld [vmem:[%s1506_s8 + $0xa0] sm:$0xff]  ;;  %v504_v20 = vld [vmem:[%s1506_s8 + $0x18] sm:$0xff]  ;;  %p1233_p1 = scmp.ne.s32.totalorder %s1671_s19, %s1232_s10  ;;  %p1737_p11 = scmp.ne.s32.totalorder %s1729_s25, 0 }
 0x13f   : > { %1024 = vmatpush1.bf16.msra.mxu0 %v1023_v11  ;;  %v509_v22 = vld [vmem:[%s1506_s8 + $0x40] sm:$0xff]  ;;  %v1029_v23 = vpack.c.bf16 %v527_v17, %v522_v16  ;;  %v526_v24 = vld [vmem:[%s1506_s8 + $0xc8] sm:$0xff]  ;;  %v503_v27 = vld [vmem:[%s1506_s8 + $0x10] sm:$0xff]  ;;  %v545_v1 = vsub.s32 0, %v544_v0  ;;  %v549_v3 = vsub.s32 1, %v544_v0  ;;  %v553_v6 = vsub.s32 2, %v544_v0 }
 0x140   : > { %1026 = vmatprep.subr.bf16.mxu0 %v1025_v12  ;;  %v1037_v25 = vpack.c.bf16 %v509_v22, %v504_v20  ;;  %v508_v4 = vld [vmem:[%s1506_s8 + $0x38] sm:$0xff]  ;;  %v537_v29 = vld [vmem:[%s1506_s8 + $0x120] sm:$0xff]  ;;  %v514_v26 = vld [vmem:[%s1506_s8 + $0x68] sm:$0xff]  ;;  %v1031_v33 = vpack.c.bf16 %v526_v24, %v521_v19  ;;  %p1234_p4 = pnand %p1233_p1, %p1737_p11 }
 0x141   : > { %v532_v5 = vld [vmem:[%s1506_s8 + $0xf8] sm:$0xff]  ;;  %v1039_v30 = vpack.c.bf16 %v508_v4, %v503_v27  ;;  %v519_v31 = vld [vmem:[%s1506_s8 + $0x90] sm:$0xff]  ;;  %v513_v32 = vld [vmem:[%s1506_s8 + $0x60] sm:$0xff] }
 0x142   : > { %1038 = vmatprep.subr.bf16.mxu1 %v1037_v25  ;;  %v531_v34 = vld [vmem:[%s1506_s8 + $0xf0] sm:$0xff]  ;;  %v536_v35 = vld [vmem:[%s1506_s8 + $0x118] sm:$0xff]  ;;  %v1041_v36 = vpack.c.bf16 %v519_v31, %v514_v26  ;;  %v518_v37 = vld [vmem:[%s1506_s8 + $0x88] sm:$0xff]  ;;  %v1033_v39 = vpack.c.bf16 %v537_v29, %v532_v5  ;;  %p1235_p5 = pneg %p1234_p4 }
 0x143   : > { %1028 = vmatpush1.bf16.msra.mxu0 %v1027_v18  ;;  %1040 = vmatpush1.bf16.msra.mxu1 %v1039_v30  ;;  %v1043_v40 = vpack.c.bf16 %v518_v37, %v513_v32  ;;  %v524_v38 = vld [vmem:[%s1506_s8 + $0xb8] sm:$0xff]  ;;  %v529_v41 = vld [vmem:[%s1506_s8 + $0xe0] sm:$0xff]  ;;  %v523_v42 = vld [vmem:[%s1506_s8 + $0xb0] sm:$0xff]  ;;  %v1035_v46 = vpack.c.bf16 %v536_v35, %v531_v34  ;;  %v561_v35 = vsub.s32 4, %v544_v0 }
 0x144   : > { %1030 = vmatprep.subr.bf16.mxu0 %v1029_v23  ;;  %1042 = vmatprep.subr.bf16.mxu1 %v1041_v36  ;;  %v505_v43 = vld [vmem:[%s1506_s8 + $0x20] sm:$0xff]  ;;  %v510_v44 = vld [vmem:[%s1506_s8 + $0x48] sm:$0xff]  ;;  %v1045_v10 = vpack.c.bf16 %v529_v41, %v524_v38  ;;  %v528_v45 = vld [vmem:[%s1506_s8 + $0xd8] sm:$0xff] }
 0x145   : > { %v534_v47 = vld [vmem:[%s1506_s8 + $0x108] sm:$0xff]  ;;  %v539_v48 = vld [vmem:[%s1506_s8 + $0x130] sm:$0xff]  ;;  %v1047_v49 = vpack.c.bf16 %v528_v45, %v523_v42  ;;  %v1053_v50 = vpack.c.bf16 %v510_v44, %v505_v43  ;;  %v533_v28 = vld [vmem:[%s1506_s8 + $0x100] sm:$0xff] }
 0x146   : > { %v1049_v51 = vpack.c.bf16 %v539_v48, %v534_v47  ;;  %v538_v21 = vld [vmem:[%s1506_s8 + $0x128] sm:$0xff]  ;;  %v515_v52 = vld [vmem:[%s1506_s8 + $0x70] sm:$0xff]  ;;  %v520_v53 = vld [vmem:[%s1506_s8 + $0x98] sm:$0xff] }
 0x147   : > { %1032 = vmatpush1.bf16.msra.mxu0 %v1031_v33  ;;  %1044 = vmatpush1.bf16.msra.mxu1 %v1043_v40  ;;  %v499_v54 = vld [vmem:[#allocation2] sm:$0xff]  ;;  %v1051_v55 = vpack.c.bf16 %v538_v21, %v533_v28  ;;  %v1057_v56 = vpack.c.bf16 %v520_v53, %v515_v52  ;;  %v525_v57 = vld [vmem:[%s1506_s8 + $0xc0] sm:$0xff]  ;;  %v530_v58 = vld [vmem:[%s1506_s8 + $0xe8] sm:$0xff] }
 0x148   : > { %1034 = vmatprep.subr.bf16.mxu0 %v1033_v39  ;;  %1046 = vmatprep.subr.bf16.mxu1 %v1045_v10  ;;  %v500_v59 = vld [vmem:[#allocation2 + $0x8] sm:$0xff]  ;;  %v1061_v60 = vpack.c.bf16 %v530_v58, %v525_v57  ;;  %v535_v61 = vld [vmem:[%s1506_s8 + $0x110] sm:$0xff]  ;;  %v541_v2 = vld [vmem:[%s1514_s30] sm:$0x1f] }
 0x149   : > { %v540_v62 = vld [vmem:[%s1506_s8 + $0x138] sm:$0xff]  ;;  %v546_v14 = vrot.slane %v541_v2, %v545_v1  ;;  %v550_v7 = vrot.slane %v541_v2, %v549_v3  ;;  %v554_v15 = vrot.slane %v541_v2, %v553_v6  ;;  %v562_v40 = vrot.slane %v541_v2, %v561_v35  ;;  %s1333_s8 = smov [#allocation8]  }
 0x14a   : > { %v1065_v9 = vpack.c.bf16 %v540_v62, %v535_v61  ;;  %s1236_s4 = sshll.u32 %s1333_s8, 4  ;;  %s1237_s4 = int_to_ptr.vmem [resolvable:$false] %s1236_s4 }
 0x14b   : > { %1036 = vmatpush1.bf16.msra.mxu0 %v1035_v46  ;;  %1048 = vmatpush1.bf16.msra.mxu1 %v1047_v49  ;;  %s1238_s21 = scalar_lea.vmem %s1237_s4, 2560  ;;  %p1239_p6 = scmp.lt.s32.totalorder %s1671_s19, %s1237_s4 }
 0x14c   : > { %1054 = vmatprep.subr.bf16.mxu0 %v1053_v50  ;;  %1050 = vmatprep.subr.bf16.mxu1 %v1049_v51  ;;  %p1240_p3 = scmp.lt.s32.totalorder %s1238_s21, %s1232_s10 }
 0x14e   : > { %980 = vmatmul.mubr.msk.f32.vlgmr.msra.gmra.mrb[0].mxu0 %vm568_vm11, %v499_v54  ;;  %p1241_p9 = por %p1240_p3, %p1239_p6 }
 0x14f   : > { %1056 = vmatpush3.bf16.msra.mxu0 %v1053_v50  ;;  %1052 = vmatpush1.bf16.msra.mxu1 %v1051_v55 }
 0x150   : > { %1058 = vmatprep.subr.bf16.mxu0 %v1057_v56  ;;  %645 = vmatprep.mubr.f32.mxu0 %v1332_v8  ;;  %p1242_p7 = pnand %p1241_p9, %p1235_p5 }
 0x152   : > { %981 = vmatmul.mubr.msk.f32.gmra.mrb[2].mxu0 %vm568_vm11, %v500_v59  ;;  %982 = vmatmul.mubr.msk.f32.vlgmr.msra.gmra.mrb[0].mxu1 %vm568_vm11, %v499_v54 }
 0x153   : > { %1060 = vmatpush3.bf16.msra.mxu0 %v1057_v56  ;;  %722 = vmatprep.mubr.f32.mxu1 %v1332_v8  ;;  %v557_v8 = vsub.s32 3, %v544_v0 }
 0x154   : > { %1062 = vmatprep.subr.bf16.mxu0 %v1061_v60  ;;  %1018 = vmatprep.mubr.msk.f32.mxu0 %vm568_vm11, %v499_v54 }
 0x155   : > { %v558_v17 = vrot.slane %v541_v2, %v557_v8 }
 0x156   : > { %983 = vmatmul.mubr.msk.f32.gmra.mrb[2].mxu1 %vm568_vm11, %v500_v59 }
 0x157   : > { %1064 = vmatpush3.bf16.msra.mxu0 %v1061_v60 }
 0x158   : > { %1066 = vmatprep.subr.bf16.mxu0 %v1065_v9 }
 0x15b   : > { %1068 = vmatpush3.bf16.msra.mxu0 %v1065_v9 }
 0x15e   : > { %1019 = vmatmul.mubr.msk.f32.vlgmr.msra.gmra.mrb[4].mxu0 %vm568_vm11, %v500_v59 }
 0x221   : > { %v641_v11 = vpop.f32.mrb[0].mxu0 }
 0x222   : > { %v642_v12 = vadd.f32 %v641_v11, %v546_v14  ;;  %v643_v13 = vpop.f32.mrb[1].mxu0 }
 0x223   : > { %v644_v16 = vadd.f32 %v643_v13, %v550_v7 }
 0x224   : > { %v804_v18 = vmax.f32 %v642_v12, 0.0 }
 0x225   : > { %v805_v19 = vmax.f32 %v644_v16, 0.0  ;;  %v647_v20 = vpop.f32.mrb[2].mxu0  ;;  %v718_v22 = vpop.f32.mrb[0].mxu1 }
 0x226   : > { %814 = vst [vmem:[%s1521_s7] sm:$0xff] %v804_v18  ;;  %v648_v23 = vadd.f32 %v647_v20, %v546_v14  ;;  %v719_v24 = vadd.f32 %v718_v22, %v554_v15  ;;  %v649_v25 = vpop.f32.mrb[3].mxu0  ;;  %v720_v27 = vpop.f32.mrb[1].mxu1 }
 0x227   : > { %815 = vst [vmem:[%s1521_s7 + $0x8] sm:$0xff] %v805_v19  ;;  %v650_v4 = vadd.f32 %v649_v25, %v550_v7  ;;  %v721_v5 = vadd.f32 %v720_v27, %v558_v17 }
 0x228   : > { %v809_v29 = vmax.f32 %v648_v23, 0.0  ;;  %v806_v30 = vmax.f32 %v719_v24, 0.0 }
 0x229   : > { %v810_v26 = vmax.f32 %v650_v4, 0.0  ;;  %v807_v31 = vmax.f32 %v721_v5, 0.0  ;;  %v724_v32 = vpop.f32.mrb[2].mxu1 }
 0x22a   : > { %819 = vst [vmem:[%s1521_s7 + $0x28] sm:$0xff] %v809_v29  ;;  %816 = vst [vmem:[%s1521_s7 + $0x10] sm:$0xff] %v806_v30  ;;  %v725_v33 = vadd.f32 %v724_v32, %v554_v15  ;;  %v726_v34 = vpop.f32.mrb[3].mxu1 }
 0x22b   : > { %820 = vst [vmem:[%s1521_s7 + $0x30] sm:$0xff] %v810_v26  ;;  %817 = vst [vmem:[%s1521_s7 + $0x18] sm:$0xff] %v807_v31  ;;  %v727_v36 = vadd.f32 %v726_v34, %v558_v17 }
 0x22c   : > { %v811_v37 = vmax.f32 %v725_v33, 0.0 }
 0x22d   : > { %v812_v39 = vmax.f32 %v727_v36, 0.0 }
 0x22e   : > { %821 = vst [vmem:[%s1521_s7 + $0x38] sm:$0xff] %v811_v37 }
 0x22f   : > { %822 = vst [vmem:[%s1521_s7 + $0x40] sm:$0xff] %v812_v39 }
 0x231   : > { %v1020_v38 = vpop.f32.mrb[4].mxu0 }
 0x232   : > { %v801_v41 = vadd.f32 %v1020_v38, %v562_v40  ;;  %v795_v42 = vpop.f32.mrb[5].mxu0 }
 0x233   : > { %v796_v43 = vadd.f32 %v795_v42, %v562_v40 }
 0x234   : > { %v813_v44 = vmax.f32 %v801_v41, 0.0 }
 0x235   : > { %v808_v10 = vmax.f32 %v796_v43, 0.0 }
 0x236   : > { %823 = vst [vmem:[%s1521_s7 + $0x48] sm:$0xff] %v813_v44 }
 0x237   : > { %818 = vst [vmem:[%s1521_s7 + $0x20] sm:$0xff] %v808_v10 }
 0x238   : > { %1245 = shalt.err (!%p1242_p7)
}
 0x239   : > { %s1246_s30 = scalar_lea.hbm %s1669_s9, 1280  ;;  %s1250_s11 = scalar_lea.hbm %s1724_s3, 6400 }
 0x23a   : > { %p1247_p10 = scmp.ne.s32.totalorder %s1669_s9, %s1246_s30  ;;  %p1251_p12 = scmp.lt.u32.totalorder %s1669_s9, %s1724_s3 }
 0x23b   : > { %p1252_p8 = scmp.lt.u32.totalorder %s1250_s11, %s1246_s30  ;;  %p1254_p1 = scmp.lt.u32.totalorder %s1246_s30, %s1669_s9 }
 0x23c   : > { %p1248_p0 = pnand %p1247_p10, %p1737_p11 }
 0x23d   : > { %p1253_p13 = por %p1252_p8, %p1251_p12 }
 0x23e   : > { %p1249_p2 = pneg %p1248_p0 }
 0x23f   : > { %p1255_p4 = por %p1254_p1, %p1253_p13 }
 0x241   : > { %p1256_p5 = pnand %p1255_p4, %p1249_p2 }
 0x243   : > { %1259 = shalt.err (!%p1256_p5)
}
 0x244   : > { %s1334_s28 = smov 640   ;;  %s1335_s24 = smov 3200  }
 0x245   : > { %s1336_s23 = smov 40  }
 0x246   : > { %1086 = dma.vmem_to_hbm [thread:$0]  (%p1737_p11), %s1671_s19, 1280, %s1669_s9, %s825_s15, %s1334_s28, %s1335_s24, %s1336_s23  }
 0x247 PF: > { %p1100_p6 = scmp.ge.s32.totalorder %s1318_s17, 2  ;;  %s856_s29 = sand.u32 1, %s1298_s12  }
 0x248   : > { %p1738_p3 = scmp.ne.s32.totalorder %s1730_s27, 0  ;;  %s857_s10 = scalar_lea.sflag [#allocation5], %s856_s29 }
 0x24a   : > { %p1096_p9 = pnand %p1100_p6, %p1738_p3 }
 0x24c   : > { %1293 = dma.done.wait (!%p1096_p9), %s857_s10, 1280  }
 0x24d   : > { %1295 = vsyncadd (!%p1096_p9), %s857_s10, 4294966016  ;;  %s22_s17 = sadd.s32 1, %s1318_s17   ;;  %s1739_s12 = smov %s1302_s13 }
 0x24e   : > { %p19_p7 = scmp.ge.s32.totalorder %s22_s17, 7   ;;  %s1740_s13 = smov %s1306_s14 }
 0x24f   : > { %s1741_s14 = smov %s1413_s26  ;;  %s1742_s15 = smov %s1314_s16 }
 0x250   : > { %s1743_s16 = smov %s1745_s20  ;;  %21 = sbr.rel (!%p19_p7) target bundleno = 8 (0x8), region = 97 }
 0x257   :  { %862 = vsyncpa [#allocation4], 1 }
 0x258   :  { %864 = vsyncpa [#allocation4 + $0x1], 1 }
 0x259   :  { %865 = vsyncpa [#allocation7], 1 }
 0x25a   :  { %867 = vsyncpa [#allocation7 + $0x1], 1 }
 0x25b   :  { %868 = vsyncpa [#allocation5], 1 }
 0x25c   :  { %870 = vsyncpa [#allocation5 + $0x1], 1 }

</bundles_post_ra>
